<compile_context>
chip_gen: v7x
topology: tpu7x:2x2x1
jax: 0.10.0
libtpu: 0.0.40
codegen_flags: <defaults>
</compile_context>

<pallas_src>
import functools

import jax
import jax.numpy as jnp
from jax.experimental import pallas as pl
from jax.experimental.pallas import tpu as pltpu


def _round_up(x, m):
    return ((x + m - 1) // m) * m


# ---------------------------------------------------------------------------
# Path A: VMEM-resident tables, transposed one-hot MXU gather (hi/lo bf16).
# ---------------------------------------------------------------------------
def _resident_kernel(u_ids_ref, i_ids_ref,
                     u_hi_ref, u_lo_ref, i_hi_ref, i_lo_ref,
                     out_ref, *, chunk_u, chunk_i):
    """One batch tile of BT (user, item) pairs.

    u_ids_ref / i_ids_ref : (1, BT) int32 id tiles (pre-clamped in wrapper)
    *_hi_ref / *_lo_ref   : (D, N_pad) bf16 transposed table splits, resident
    out_ref               : (1, BT) float32 lane-dense score row
    """
    bt = out_ref.shape[1]
    d = u_hi_ref.shape[0]

    u_idx = u_ids_ref[0, :]                                    # (BT,) in lanes
    i_idx = i_ids_ref[0, :]

    def gather_t(hi_ref, lo_ref, idx, chunk):
        """Exact gather of idx rows -> (D, BT) f32, chunked over table rows."""
        n_pad = hi_ref.shape[1]
        num_chunks = n_pad // chunk

        def body(c, acc):
            start = pl.multiple_of(c * chunk, 128)             # lane-aligned
            rows = jax.lax.broadcasted_iota(jnp.int32, (chunk, bt), 0) + start
            # 0/1 one-hot is exact in bf16; ids broadcast lane->sublane (cheap).
            oh = (rows == idx[None, :]).astype(jnp.bfloat16)   # (chunk, BT)
            # Two DEFAULT-precision bf16 MXU passes, f32 accumulate; each pass
            # gathers one bf16 split term exactly (single nonzero per column).
            acc = acc + jnp.dot(hi_ref[:, pl.ds(start, chunk)], oh,
                                preferred_element_type=jnp.float32)
            acc = acc + jnp.dot(lo_ref[:, pl.ds(start, chunk)], oh,
                                preferred_element_type=jnp.float32)
            return acc

        acc0 = jnp.zeros((d, bt), jnp.float32)
        return jax.lax.fori_loop(0, num_chunks, body, acc0,
                                 unroll=num_chunks <= 2)

    u_rows_t = gather_t(u_hi_ref, u_lo_ref, u_idx, chunk_u)    # (D, BT) f32
    i_rows_t = gather_t(i_hi_ref, i_lo_ref, i_idx, chunk_i)    # (D, BT) f32

    # Per-pair dot: VPU multiply + sublane (axis-0) reduce -> already (1, BT)
    # lane-dense; sigmoid runs on the EUP; unmasked lane-dense store.
    s = jnp.sum(u_rows_t * i_rows_t, axis=0, keepdims=True)    # (1, BT) f32
    out_ref[...] = jax.nn.sigmoid(s).astype(out_ref.dtype)


# ---------------------------------------------------------------------------
# Path B: HBM-resident tables, per-row async-copy gather (exact f32).
# ---------------------------------------------------------------------------
def _hbm_gather_kernel(u_ids_ref, i_ids_ref,     # scalar-prefetch SMEM (T, BT)
                       u_tab_ref, i_tab_ref,     # pl.ANY (HBM) (Nu, D), (Ni, D)
                       out_ref,                  # (1, BT) f32
                       u_buf, i_buf, sem):       # VMEM (BT, D) x2, DMA sems (2,)
    t = pl.program_id(0)
    bt = out_ref.shape[1]

    # Issue all row-gather DMAs for this tile (they run concurrently).
    @pl.loop(0, bt)
    def _issue(j):
        uid = u_ids_ref[t, j]
        iid = i_ids_ref[t, j]
        pltpu.make_async_copy(u_tab_ref.at[pl.ds(uid, 1), :],
                              u_buf.at[pl.ds(j, 1), :], sem.at[0]).start()
        pltpu.make_async_copy(i_tab_ref.at[pl.ds(iid, 1), :],
                              i_buf.at[pl.ds(j, 1), :], sem.at[1]).start()

    # Drain: every issued copy has identical shape, so waiting on a same-shaped
    # descriptor per row consumes exactly the completions we produced.
    @pl.loop(0, bt)
    def _drain(j):
        pltpu.make_async_copy(u_tab_ref.at[pl.ds(0, 1), :],
                              u_buf.at[pl.ds(0, 1), :], sem.at[0]).wait()
        pltpu.make_async_copy(i_tab_ref.at[pl.ds(0, 1), :],
                              i_buf.at[pl.ds(0, 1), :], sem.at[1]).wait()

    u = u_buf[...].astype(jnp.float32)                         # (BT, D)
    v = i_buf[...].astype(jnp.float32)
    s = jnp.sum(u * v, axis=-1)                                # (BT,)
    out_ref[...] = jax.nn.sigmoid(s)[None, :].astype(out_ref.dtype)


# ---------------------------------------------------------------------------
# Wrapper
# ---------------------------------------------------------------------------
def puremf_forward(user_table, item_table, users, items, *,
                   block_b=512, force_hbm_gather=False):
    """sigmoid(sum(E_user[users] * E_item[items], axis=-1)) -> (B,) float32."""
    B = int(users.shape[0])
    n_users, d = user_table.shape
    n_items, d2 = item_table.shape
    assert d == d2

    user_table = user_table.astype(jnp.float32)
    item_table = item_table.astype(jnp.float32)

    # Clamp ids so a bad id can never address a wrong/pad row.
    users = jnp.clip(users.astype(jnp.int32), 0, n_users - 1)
    items = jnp.clip(items.astype(jnp.int32), 0, n_items - 1)

    # Batch tiling: BT a multiple of 128 (lane-dense), chosen so a moderate
    # batch still yields >= 2 tiles (both v7x TensorCores get work).
    bt = max(128, min(block_b, _round_up(max((B + 1) // 2, 1), 128)))
    num_tiles = _round_up(B, bt) // bt
    b_pad = num_tiles * bt
    if b_pad != B:
        users = jnp.pad(users, (0, b_pad - B))   # pad ids are valid (clamped 0)
        items = jnp.pad(items, (0, b_pad - B))
    users = users.reshape(num_tiles, bt)
    items = items.reshape(num_tiles, bt)

    # Generation-aware per-TensorCore VMEM budget (~85% of physical capacity:
    # ~109 MiB on v5e/v6e, ~54 MiB per core on v7x).
    try:
        vmem_cap = int(pltpu.get_tpu_info().vmem_capacity_bytes)
    except Exception:
        vmem_cap = 64 << 20                      # conservative v7x per-TC value
    budget = max(int(vmem_cap * 0.85), 16 << 20)

    # Lane-aligned contraction chunking of the one-hot gather (<= 512 rows).
    max_chunk = 512

    def _chunking(n):
        num_chunks = -(-n // max_chunk)
        chunk = _round_up(-(-n // num_chunks), 128)
        return chunk, chunk * num_chunks

    chunk_u, nu_pad = _chunking(n_users)
    chunk_i, ni_pad = _chunking(n_items)

    # Accurate VMEM need of the resident path (single-buffered bf16 tables,
    # one-hot chunks, f32 (D, BT) gather accumulators, id/out tiles, slack).
    tab_bytes = 2 * (nu_pad + ni_pad) * d * 2            # hi+lo bf16 tables
    acc_bytes = 2 * d * bt * 4                           # (D, BT) f32 accs
    oh_bytes = 2 * max(chunk_u, chunk_i) * bt * 2        # live bf16 one-hots
    io_bytes = 2 * (2 * bt * 4) * 2 + 2 * bt * 4         # id tiles + out tile
    need = tab_bytes + acc_bytes + oh_bytes + io_bytes + (4 << 20)

    use_resident = (need <= budget) and not force_hbm_gather

    if use_resident:
        # Transpose to (D, N_pad), zero-pad rows, split f32 -> hi/lo bf16.
        def split_t(tab, n_pad):
            tab_t = jnp.pad(tab.T, ((0, 0), (0, n_pad - tab.shape[0])))
            hi = tab_t.astype(jnp.bfloat16)
            lo = (tab_t - hi.astype(jnp.float32)).astype(jnp.bfloat16)
            return hi, lo

        u_hi, u_lo = split_t(user_table, nu_pad)
        i_hi, i_lo = split_t(item_table, ni_pad)

        kernel = functools.partial(_resident_kernel,
                                   chunk_u=chunk_u, chunk_i=chunk_i)
        # Unblocked VMEM operands: whole tables resident, single copy (no
        # pointless double-buffering of constant blocks).
        table_spec = pl.BlockSpec(memory_space=pltpu.MemorySpace.VMEM)

        out = pl.pallas_call(
            kernel,
            out_shape=jax.ShapeDtypeStruct((num_tiles, bt), jnp.float32),
            grid=(num_tiles,),
            in_specs=[
                pl.BlockSpec((1, bt), lambda t: (t, 0)),    # user-id tile
                pl.BlockSpec((1, bt), lambda t: (t, 0)),    # item-id tile
                table_spec, table_spec,                     # user table hi/lo
                table_spec, table_spec,                     # item table hi/lo
            ],
            out_specs=pl.BlockSpec((1, bt), lambda t: (t, 0)),
            compiler_params=pltpu.CompilerParams(
                dimension_semantics=("parallel",),          # tiles independent
                vmem_limit_bytes=int(min(budget, max(need, 32 << 20))),
            ),
        )(users, items, u_hi, u_lo, i_hi, i_lo)
    else:
        # Large-table path: tables stay in HBM, ids scalar-prefetched to SMEM,
        # per-row DMA gather into VMEM scratch.
        dma_need = 2 * bt * d * 4 + 2 * bt * 4 + (4 << 20)
        out = pl.pallas_call(
            _hbm_gather_kernel,
            out_shape=jax.ShapeDtypeStruct((num_tiles, bt), jnp.float32),
            grid_spec=pltpu.PrefetchScalarGridSpec(
                num_scalar_prefetch=2,
                grid=(num_tiles,),
                in_specs=[pl.BlockSpec(memory_space=pl.ANY),
                          pl.BlockSpec(memory_space=pl.ANY)],
                out_specs=pl.BlockSpec((1, bt), lambda t, u_ids, i_ids: (t, 0)),
                scratch_shapes=[pltpu.VMEM((bt, d), jnp.float32),
                                pltpu.VMEM((bt, d), jnp.float32),
                                pltpu.SemaphoreType.DMA((2,))],
            ),
            compiler_params=pltpu.CompilerParams(
                dimension_semantics=("arbitrary",),
                vmem_limit_bytes=int(min(budget, max(dma_need, 16 << 20))),
            ),
        )(users, items, user_table, item_table)

    return out.reshape(b_pad)[:B]


if __name__ == "__main__":
    # Deterministic synthetic "PureMF" parameters (N(0,1) init, like the module).
    num_users, num_items, latent_dim = 96, 160, 128
    batch = 8

    key = jax.random.PRNGKey(0)
    k_u, k_i, k_uid, k_iid = jax.random.split(key, 4)
    user_table = jax.random.normal(k_u, (num_users, latent_dim), dtype=jnp.float32)
    item_table = jax.random.normal(k_i, (num_items, latent_dim), dtype=jnp.float32)
    users = jax.random.randint(k_uid, (batch,), 0, num_users, dtype=jnp.int32)
    items = jax.random.randint(k_iid, (batch,), 0, num_items, dtype=jnp.int32)

    # Pure-JAX reference of the forward semantics.
    ref = jax.nn.sigmoid(
        jnp.sum(user_table[users] * item_table[items], axis=-1))

    # Path A: VMEM-resident tables, MXU one-hot gather (hi/lo bf16 split).
    scores = jax.block_until_ready(
        puremf_forward(user_table, item_table, users, items))
    assert scores.shape == (batch,)
    # 2-term bf16 split -> ~2^-16 relative table error; sigmoid outputs agree
    # to well under 5e-4 (a wrong-row gather would be off by O(0.1)).
    assert jnp.allclose(scores, ref, atol=5e-4, rtol=5e-4), (scores, ref)

    # Path B: HBM tables + per-row DMA gather (exact f32 gather).
    scores_dma = jax.block_until_ready(
        puremf_forward(user_table, item_table, users, items,
                       force_hbm_gather=True))
    assert scores_dma.shape == (batch,)
    assert jnp.allclose(scores_dma, ref, atol=1e-5, rtol=1e-5), (scores_dma, ref)

    print("KERNEL_OK")
</pallas_src>

<mosaic_0001>
module attributes {stable_mosaic.version = 11 : i64} {
  func.func @_resident_kernel(%arg0: i32, %arg1: memref<1x128xi32, #tpu.memory_space<vmem>>, %arg2: memref<1x128xi32, #tpu.memory_space<vmem>>, %arg3: memref<128x128xbf16, #tpu.memory_space<vmem>>, %arg4: memref<128x128xbf16, #tpu.memory_space<vmem>>, %arg5: memref<128x256xbf16, #tpu.memory_space<vmem>>, %arg6: memref<128x256xbf16, #tpu.memory_space<vmem>>, %arg7: memref<1x128xf32, #tpu.memory_space<vmem>>) attributes {dimension_semantics = [#tpu.dimension_semantics<parallel>], iteration_bounds = array<i64: 1>, scalar_prefetch = 0 : i64, scratch_operands = 0 : i64, tpu.core_type = #tpu.core_type<tc>, window_params = [{transform_indices = @transform_0, window_bounds = array<i64: 1, 128>}, {transform_indices = @transform_1, window_bounds = array<i64: 1, 128>}, {pipeline_mode = #tpu.pipeline_mode<synchronous>, transform_indices = @transform_2, window_bounds = array<i64: 128, 128>}, {pipeline_mode = #tpu.pipeline_mode<synchronous>, transform_indices = @transform_3, window_bounds = array<i64: 128, 128>}, {pipeline_mode = #tpu.pipeline_mode<synchronous>, transform_indices = @transform_4, window_bounds = array<i64: 128, 256>}, {pipeline_mode = #tpu.pipeline_mode<synchronous>, transform_indices = @transform_5, window_bounds = array<i64: 128, 256>}, {transform_indices = @transform_6, window_bounds = array<i64: 1, 128>}]} {
    %c0 = arith.constant 0 : index
    %c0_0 = arith.constant 0 : index
    %0 = vector.load %arg1[%c0, %c0_0] : memref<1x128xi32, #tpu.memory_space<vmem>>, vector<1x128xi32>
    %1 = vector.shape_cast %0 : vector<1x128xi32> to vector<128xi32>
    %c0_1 = arith.constant 0 : index
    %c0_2 = arith.constant 0 : index
    %2 = vector.load %arg2[%c0_1, %c0_2] : memref<1x128xi32, #tpu.memory_space<vmem>>, vector<1x128xi32>
    %3 = vector.shape_cast %2 : vector<1x128xi32> to vector<128xi32>
    %cst = arith.constant 0.000000e+00 : f32
    %4 = vector.broadcast %cst : f32 to vector<128x128xf32>
    %c0_i32 = arith.constant 0 : i32
    %c128_i32 = arith.constant 128 : i32
    %5 = arith.muli %c0_i32, %c128_i32 : i32
    %6 = tpu.assume_multiple %5, 128 : i32
    %7 = tpu.iota {dimensions = array<i32: 0>} : vector<128x128xi32>
    %8 = vector.broadcast %6 : i32 to vector<128x128xi32>
    %9 = arith.addi %7, %8 : vector<128x128xi32>
    %10 = vector.shape_cast %1 : vector<128xi32> to vector<1x128xi32>
    %11 = vector.broadcast %10 : vector<1x128xi32> to vector<128x128xi32>
    %12 = arith.cmpi eq, %9, %11 : vector<128x128xi32>
    %13 = arith.extui %12 : vector<128x128xi1> to vector<128x128xi32>
    %14 = arith.sitofp %13 : vector<128x128xi32> to vector<128x128xf32>
    %15 = arith.truncf %14 : vector<128x128xf32> to vector<128x128xbf16>
    %c0_3 = arith.constant 0 : index
    %16 = arith.index_cast %6 : i32 to index
    %17 = vector.load %arg3[%c0_3, %16] : memref<128x128xbf16, #tpu.memory_space<vmem>>, vector<128x128xbf16>
    %cst_4 = arith.constant dense<0.000000e+00> : vector<128x128xf32>
    %18 = tpu.matmul %17, %15, %cst_4 {dimension_numbers = #tpu.dot_dimension_numbers<[1], [0], [0], [1], [0, 0, 1, 1], [], []>} : vector<128x128xbf16>, vector<128x128xbf16>, vector<128x128xf32> -> vector<128x128xf32>
    %19 = arith.addf %4, %18 : vector<128x128xf32>
    %c0_5 = arith.constant 0 : index
    %20 = arith.index_cast %6 : i32 to index
    %21 = vector.load %arg4[%c0_5, %20] : memref<128x128xbf16, #tpu.memory_space<vmem>>, vector<128x128xbf16>
    %cst_6 = arith.constant dense<0.000000e+00> : vector<128x128xf32>
    %22 = tpu.matmul %21, %15, %cst_6 {dimension_numbers = #tpu.dot_dimension_numbers<[1], [0], [0], [1], [0, 0, 1, 1], [], []>} : vector<128x128xbf16>, vector<128x128xbf16>, vector<128x128xf32> -> vector<128x128xf32>
    %23 = arith.addf %19, %22 : vector<128x128xf32>
    %c1_i32 = arith.constant 1 : i32
    %cst_7 = arith.constant 0.000000e+00 : f32
    %24 = vector.broadcast %cst_7 : f32 to vector<128x128xf32>
    %c0_i32_8 = arith.constant 0 : i32
    %c256_i32 = arith.constant 256 : i32
    %25 = arith.muli %c0_i32_8, %c256_i32 : i32
    %26 = tpu.assume_multiple %25, 128 : i32
    %27 = tpu.iota {dimensions = array<i32: 0>} : vector<256x128xi32>
    %28 = vector.broadcast %26 : i32 to vector<256x128xi32>
    %29 = arith.addi %27, %28 : vector<256x128xi32>
    %30 = vector.shape_cast %3 : vector<128xi32> to vector<1x128xi32>
    %31 = vector.broadcast %30 : vector<1x128xi32> to vector<256x128xi32>
    %32 = arith.cmpi eq, %29, %31 : vector<256x128xi32>
    %33 = arith.extui %32 : vector<256x128xi1> to vector<256x128xi32>
    %34 = arith.sitofp %33 : vector<256x128xi32> to vector<256x128xf32>
    %35 = arith.truncf %34 : vector<256x128xf32> to vector<256x128xbf16>
    %c0_9 = arith.constant 0 : index
    %36 = arith.index_cast %26 : i32 to index
    %37 = vector.load %arg5[%c0_9, %36] : memref<128x256xbf16, #tpu.memory_space<vmem>>, vector<128x256xbf16>
    %cst_10 = arith.constant dense<0.000000e+00> : vector<128x128xf32>
    %38 = tpu.matmul %37, %35, %cst_10 {dimension_numbers = #tpu.dot_dimension_numbers<[1], [0], [0], [1], [0, 0, 1, 1], [], []>} : vector<128x256xbf16>, vector<256x128xbf16>, vector<128x128xf32> -> vector<128x128xf32>
    %39 = arith.addf %24, %38 : vector<128x128xf32>
    %c0_11 = arith.constant 0 : index
    %40 = arith.index_cast %26 : i32 to index
    %41 = vector.load %arg6[%c0_11, %40] : memref<128x256xbf16, #tpu.memory_space<vmem>>, vector<128x256xbf16>
    %cst_12 = arith.constant dense<0.000000e+00> : vector<128x128xf32>
    %42 = tpu.matmul %41, %35, %cst_12 {dimension_numbers = #tpu.dot_dimension_numbers<[1], [0], [0], [1], [0, 0, 1, 1], [], []>} : vector<128x256xbf16>, vector<256x128xbf16>, vector<128x128xf32> -> vector<128x128xf32>
    %43 = arith.addf %39, %42 : vector<128x128xf32>
    %c1_i32_13 = arith.constant 1 : i32
    %44 = arith.mulf %23, %43 : vector<128x128xf32>
    %cst_14 = arith.constant dense<0.000000e+00> : vector<128xf32>
    %45 = vector.multi_reduction <add>, %44, %cst_14 [0] : vector<128x128xf32> to vector<128xf32>
    %46 = vector.shape_cast %45 : vector<128xf32> to vector<1x128xf32>
    %47 = arith.negf %46 : vector<1x128xf32>
    %48 = math.exp %47 : vector<1x128xf32>
    %cst_15 = arith.constant 1.000000e+00 : f32
    %49 = vector.broadcast %cst_15 : f32 to vector<1x128xf32>
    %50 = arith.addf %49, %48 : vector<1x128xf32>
    %51 = arith.divf %49, %50 : vector<1x128xf32>
    %c0_16 = arith.constant 0 : index
    %c0_17 = arith.constant 0 : index
    %52 = vector.load %arg7[%c0_16, %c0_17] : memref<1x128xf32, #tpu.memory_space<vmem>>, vector<1x128xf32>
    tpu.vector_store %arg7[%c0_16, %c0_17], %51 {strides = array<i32>} : memref<1x128xf32, #tpu.memory_space<vmem>>, vector<1x128xf32>,
    return
  }
  func.func @transform_0(%arg0: i32) -> (i32, i32) {
    %c0_i32 = arith.constant 0 : i32
    %c0_i32_0 = arith.constant 0 : i32
    return %arg0, %c0_i32 : i32, i32
  }
  func.func @transform_1(%arg0: i32) -> (i32, i32) {
    %c0_i32 = arith.constant 0 : i32
    %c0_i32_0 = arith.constant 0 : i32
    return %arg0, %c0_i32 : i32, i32
  }
  func.func @transform_2(%arg0: i32) -> (i32, i32) {
    %c0_i32 = arith.constant 0 : i32
    %c0_i32_0 = arith.constant 0 : i32
    %c0_i32_1 = arith.constant 0 : i32
    return %c0_i32, %c0_i32_0 : i32, i32
  }
  func.func @transform_3(%arg0: i32) -> (i32, i32) {
    %c0_i32 = arith.constant 0 : i32
    %c0_i32_0 = arith.constant 0 : i32
    %c0_i32_1 = arith.constant 0 : i32
    return %c0_i32, %c0_i32_0 : i32, i32
  }
  func.func @transform_4(%arg0: i32) -> (i32, i32) {
    %c0_i32 = arith.constant 0 : i32
    %c0_i32_0 = arith.constant 0 : i32
    %c0_i32_1 = arith.constant 0 : i32
    return %c0_i32, %c0_i32_0 : i32, i32
  }
  func.func @transform_5(%arg0: i32) -> (i32, i32) {
    %c0_i32 = arith.constant 0 : i32
    %c0_i32_0 = arith.constant 0 : i32
    %c0_i32_1 = arith.constant 0 : i32
    return %c0_i32, %c0_i32_0 : i32, i32
  }
  func.func @transform_6(%arg0: i32) -> (i32, i32) {
    %c0_i32 = arith.constant 0 : i32
    %c0_i32_0 = arith.constant 0 : i32
    return %arg0, %c0_i32 : i32, i32
  }
}

</mosaic_0001>

<bundles_post_ra>
// kernel: tpu_custom_call.1
= control target key start
LH: loop header
LB: loop body
LE: loop exit
PB: predicated region body
PF: predicated region fallthrough
CT: control target
= control target key end

     0   :  { %11 = vsyncpa [#allocation3], 0  ;;  %s2199_s0 = inlined_call_operand.hbm [shape: s32[1,128], index: 0, kind: input, shape index: {}]   ;;  %s2200_s1 = inlined_call_operand.vmem [shape: s32[1,128], index: 1, kind: input, shape index: {}]   ;;  %s2201_s2 = inlined_call_operand.hbm [shape: bf16[128,128], index: 2, kind: input, shape index: {}]   ;;  %s2202_s3 = inlined_call_operand.hbm [shape: bf16[128,128], index: 3, kind: input, shape index: {}]   ;;  %s2203_s4 = inlined_call_operand.hbm [shape: bf16[128,256], index: 4, kind: input, shape index: {}]   ;;  %s2204_s5 = inlined_call_operand.hbm [shape: bf16[128,256], index: 5, kind: input, shape index: {}]   ;;  %s2205_s6 = inlined_call_operand.hbm [shape: f32[1,128], index: 6, kind: output, shape index: {}]  }
   0x1   :  { %12 = vsyncpa [#allocation6], 0 }
   0x2   :  { %13 = vsyncpa [#allocation9], 0 }
   0x3   :  { %14 = vsyncpa [#allocation4], 0  ;;  %s1758_s21 = smov [#allocation5]   ;;  %s1618_s25 = scalar_lea.hbm %s2201_s2, 1024 }
   0x4   :  { %s32_s22 = sshll.u32 %s1758_s21, 4  ;;  %p1619_p0 = scmp.ne.s32.totalorder %s2201_s2, %s1618_s25  ;;  %s33_s22 = int_to_ptr.vmem [resolvable:$true] %s32_s22 }
   0x5   :  { %p1622_p1 = scmp.lt.u32.totalorder %s1618_s25, %s2201_s2 }
   0x7   :  { %p1624_p2 = pnand %p1622_p1, %p1619_p0 }
   0x9   :  { %1627 = shalt.err (!%p1624_p2)
}
   0xa   :  { %s1628_s30 = scalar_lea.vmem %s33_s22, 1024  ;;  %p1633_p4 = scmp.lt.s32.totalorder %s33_s22, %s33_s22 }
   0xb   :  { %p1629_p3 = scmp.ne.s32.totalorder %s33_s22, %s1628_s30  ;;  %p1634_p5 = scmp.lt.s32.totalorder %s1628_s30, %s1628_s30 }
   0xd   :  { %p1635_p6 = por %p1634_p5, %p1633_p4 }
   0xf   :  { %p1636_p7 = pnand %p1635_p6, %p1629_p3 }
  0x11   :  { %1639 = shalt.err (!%p1636_p7)
}
  0x12   :  { %s1759_s7 = smov 64   ;;  %s1760_s8 = smov 4  }
  0x13   :  { %38 = dma.hbm_to_vmem [thread:$0]  %s2201_s2, 1024, %s33_s22, [#allocation6], %s1759_s7, %s1759_s7, %s1760_s8  }
  0x14   :  { %s1761_s11 = smov [#allocation8]   ;;  %s1640_s15 = scalar_lea.hbm %s2203_s4, 2048 }
  0x15   :  { %s56_s12 = sshll.u32 %s1761_s11, 4  ;;  %p1641_p8 = scmp.ne.s32.totalorder %s2203_s4, %s1640_s15  ;;  %s57_s12 = int_to_ptr.vmem [resolvable:$true] %s56_s12 }
  0x16   :  { %p1644_p9 = scmp.lt.u32.totalorder %s1640_s15, %s2203_s4 }
  0x18   :  { %p1646_p10 = pnand %p1644_p9, %p1641_p8 }
  0x1a   :  { %1649 = shalt.err (!%p1646_p10)
}
  0x1b   :  { %s1650_s20 = scalar_lea.vmem %s57_s12, 2048  ;;  %p1655_p12 = scmp.lt.s32.totalorder %s57_s12, %s57_s12 }
  0x1c   :  { %p1651_p11 = scmp.ne.s32.totalorder %s57_s12, %s1650_s20  ;;  %p1656_p13 = scmp.lt.s32.totalorder %s1650_s20, %s1650_s20 }
  0x1e   :  { %p1657_p0 = por %p1656_p13, %p1655_p12 }
  0x20   :  { %p1658_p1 = pnand %p1657_p0, %p1651_p11 }
  0x22   :  { %1661 = shalt.err (!%p1658_p1)
}
  0x23   :  { %s1762_s2 = smov 128   ;;  %s1763_s21 = smov 8  }
  0x24   :  { %62 = dma.hbm_to_vmem [thread:$0]  %s2203_s4, 2048, %s57_s12, [#allocation9], %s1762_s2, %s1762_s2, %s1763_s21  }
  0x25   :  { %s1764_s24 = smov [#allocation2]   ;;  %s1765_s26 = smov [#allocation7]  }
  0x26   :  { %s21_s25 = sshll.u32 %s1764_s24, 4  ;;  %s44_s27 = sshll.u32 %s1765_s26, 4  ;;  %s22_s25 = int_to_ptr.vmem [resolvable:$true] %s21_s25  ;;  %s1834_s27 = int_to_ptr.vmem [resolvable:$true] %s44_s27 }
  0x27   :  { %s1662_s30 = scalar_lea.hbm %s2199_s0, 16 }
  0x28   :  { %p1663_p2 = scmp.ne.s32.totalorder %s2199_s0, %s1662_s30  ;;  %p1666_p3 = scmp.lt.u32.totalorder %s1662_s30, %s2199_s0 }
  0x2a   :  { %p1668_p4 = pnand %p1666_p3, %p1663_p2 }
  0x2c   :  { %1671 = shalt.err (!%p1668_p4)
}
  0x2d   :  { %s1672_s4 = scalar_lea.vmem %s22_s25, 16  ;;  %s1676_s12 = scalar_lea.vmem %s22_s25, 32 }
  0x2e   :  { %p1673_p5 = scmp.ne.s32.totalorder %s22_s25, %s1672_s4  ;;  %p1677_p6 = scmp.lt.s32.totalorder %s22_s25, %s22_s25 }
  0x2f   :  { %p1678_p7 = scmp.lt.s32.totalorder %s1676_s12, %s1672_s4 }
  0x31   :  { %p1679_p8 = por %p1678_p7, %p1677_p6 }
  0x33   :  { %p1680_p9 = pnand %p1679_p8, %p1673_p5 }
  0x35   :  { %1683 = shalt.err (!%p1680_p9)
}
  0x36   :  { %24 = dma.hbm_to_vmem [thread:$0]  %s2199_s0, 16, %s22_s25, [#allocation3]  }
  0x37   :  { %s1684_s18 = scalar_lea.hbm %s2202_s3, 1024 }
  0x38   :  { %p1685_p10 = scmp.ne.s32.totalorder %s2202_s3, %s1684_s18  ;;  %p1688_p11 = scmp.lt.u32.totalorder %s1684_s18, %s2202_s3 }
  0x3a   :  { %p1690_p12 = pnand %p1688_p11, %p1685_p10 }
  0x3c   :  { %1693 = shalt.err (!%p1690_p12)
}
  0x3d   :  { %s1694_s24 = scalar_lea.vmem %s1834_s27, 1024  ;;  %p1699_p0 = scmp.lt.s32.totalorder %s1834_s27, %s1834_s27 }
  0x3e   :  { %p1695_p13 = scmp.ne.s32.totalorder %s1834_s27, %s1694_s24  ;;  %p1700_p1 = scmp.lt.s32.totalorder %s1694_s24, %s1694_s24 }
  0x40   :  { %p1701_p2 = por %p1700_p1, %p1699_p0 }
  0x42   :  { %p1702_p3 = pnand %p1701_p2, %p1695_p13 }
  0x44   :  { %1705 = shalt.err (!%p1702_p3)
}
  0x45   :  { %50 = dma.hbm_to_vmem [thread:$0]  %s2202_s3, 1024, %s1834_s27, [#allocation6], %s1759_s7, %s1759_s7, %s1760_s8  }
  0x46   :  { %s1766_s26 = smov [#allocation10]   ;;  %s1706_s9 = scalar_lea.hbm %s2204_s5, 2048 }
  0x47   :  { %s68_s28 = sshll.u32 %s1766_s26, 4  ;;  %p1707_p4 = scmp.ne.s32.totalorder %s2204_s5, %s1706_s9  ;;  %s69_s28 = int_to_ptr.vmem [resolvable:$true] %s68_s28 }
  0x48   :  { %p1710_p5 = scmp.lt.u32.totalorder %s1706_s9, %s2204_s5 }
  0x4a   :  { %p1712_p6 = pnand %p1710_p5, %p1707_p4 }
  0x4c   :  { %1715 = shalt.err (!%p1712_p6)
}
  0x4d   :  { %s1716_s12 = scalar_lea.vmem %s69_s28, 2048  ;;  %p1721_p8 = scmp.lt.s32.totalorder %s69_s28, %s69_s28 }
  0x4e   :  { %p1717_p7 = scmp.ne.s32.totalorder %s69_s28, %s1716_s12  ;;  %p1722_p9 = scmp.lt.s32.totalorder %s1716_s12, %s1716_s12 }
  0x50   :  { %p1723_p10 = por %p1722_p9, %p1721_p8 }
  0x52   :  { %p1724_p11 = pnand %p1723_p10, %p1717_p7 }
  0x54   :  { %1727 = shalt.err (!%p1724_p11)
}
  0x55   :  { %74 = dma.hbm_to_vmem [thread:$0]  %s2204_s5, 2048, %s69_s28, [#allocation9], %s1762_s2, %s1762_s2, %s1763_s21  }
  0x56   :  { %1750 = dma.done.wait [#allocation3], 16  }
  0x57   :  { %1751 = vsyncadd [#allocation3], 4294967280 }
  0x58   :  { %1752 = dma.done.wait [#allocation6], 2048  }
  0x59   :  { %1753 = vsyncadd [#allocation6], 4294965248 }
  0x5a   :  { %1754 = dma.done.wait [#allocation9], 4096  }
  0x5b   :  { %1755 = vsyncadd [#allocation9], 4294963200  ;;  %v93_v0 = vlaneseq  ;;  %v1900_v7 = vld [vmem:[#allocation2] ss:$0 sm:$0xff]  ;;  %v1550_v8 = vld [vmem:[#allocation7] sm:$0xff]  }
  0x5c   :  { %1475 = vmatprep.mubr.bf16.mxu1 %v1550_v8  ;;  %v1551_v9 = vld [vmem:[#allocation5] sm:$0xff]   ;;  %v1767_v10 = vmov 1.0|1.0   ;;  %v2021_v26 = vld [vmem:[%s2200_s1] ss:$0 sm:$0xff]  ;;  %v1552_v30 = vld [vmem:[#allocation7 + $0x8] sm:$0xff]  }
  0x5d   :  { %v1883_v1 = vshrl.u32 %v93_v0, 7  ;;  %1507 = vmatprep.mubr.bf16.mxu0 %v1551_v9  ;;  %v1553_v31 = vld [vmem:[#allocation5 + $0x8] sm:$0xff]   ;;  %v1554_v34 = vld [vmem:[#allocation7 + $0x10] sm:$0xff]   ;;  %v1556_v38 = vld [vmem:[#allocation7 + $0x18] sm:$0xff]   ;;  %s1768_s1 = smov [#allocation11]  }
  0x5e   :  { %v1555_v35 = vld [vmem:[#allocation5 + $0x10] sm:$0xff]   ;;  %v1557_v39 = vld [vmem:[#allocation5 + $0x18] sm:$0xff]   ;;  %v1558_v42 = vld [vmem:[#allocation7 + $0x20] sm:$0xff]   ;;  %s1093_s2 = sshll.u32 %s1768_s1, 4  ;;  %s1094_s2 = int_to_ptr.vmem [resolvable:$true] %s1093_s2 }
  0x5f   :  { %v1886_v2 = vadd.s32 8, %v1883_v1  ;;  %v1889_v3 = vadd.s32 16, %v1883_v1  ;;  %v1892_v4 = vadd.s32 24, %v1883_v1  ;;  %v1895_v5 = vadd.s32 32, %v1883_v1  ;;  %v1559_v43 = vld [vmem:[#allocation5 + $0x20] sm:$0xff]   ;;  %v1560_v46 = vld [vmem:[#allocation7 + $0x28] sm:$0xff]   ;;  %p1733_p13 = scmp.lt.s32.totalorder %s1094_s2, %s1094_s2 }
  0x60   :  { %v1898_v6 = vadd.s32 40, %v1883_v1  ;;  %vm131_vm0 = vcmp.eq.s32.totalorder %v1883_v1, %v1900_v7  ;;  %v1921_v12 = vadd.s32 48, %v1883_v1  ;;  %v1924_v13 = vadd.s32 56, %v1883_v1  ;;  %v1561_v47 = vld [vmem:[#allocation5 + $0x28] sm:$0xff]   ;;  %v1562_v50 = vld [vmem:[#allocation7 + $0x30] sm:$0xff]   ;;  %v1564_v54 = vld [vmem:[#allocation7 + $0x38] sm:$0xff]  }
  0x61   :  { %vm132_vm1 = vcmp.eq.s32.totalorder %v1886_v2, %v1900_v7  ;;  %vm133_vm2 = vcmp.eq.s32.totalorder %v1889_v3, %v1900_v7  ;;  %vm134_vm3 = vcmp.eq.s32.totalorder %v1892_v4, %v1900_v7  ;;  %vm135_vm6 = vcmp.eq.s32.totalorder %v1895_v5, %v1900_v7  ;;  %v1563_v51 = vld [vmem:[#allocation5 + $0x30] sm:$0xff]   ;;  %v1565_v55 = vld [vmem:[#allocation5 + $0x38] sm:$0xff]   ;;  %v1568_v56 = vld [vmem:[#allocation10 + $0x4] ss:$8 sps:$4 sm:$0xff]   ;;  %s1728_s21 = scalar_lea.vmem %s1094_s2, 16  ;;  %s1732_s27 = scalar_lea.vmem %s1094_s2, 32 }
  0x62   :  { %vm1129_vm4 = vmpackc.low %vm132_vm1, %vm131_vm0  ;;  %vm136_vm7 = vcmp.eq.s32.totalorder %v1898_v6, %v1900_v7  ;;  %vm137_vm9 = vcmp.eq.s32.totalorder %v1921_v12, %v1900_v7  ;;  %vm138_vm10 = vcmp.eq.s32.totalorder %v1924_v13, %v1900_v7  ;;  %v1943_v15 = vadd.s32 64, %v1883_v1  ;;  %v1571_v57 = vld [vmem:[#allocation8 + $0x4] ss:$8 sps:$4 sm:$0xff]   ;;  %v1566_v58 = vld [vmem:[#allocation10] ss:$8 sps:$4 sm:$0xff]   ;;  %p1729_p12 = scmp.ne.s32.totalorder %s1094_s2, %s1728_s21  ;;  %p1734_p0 = scmp.lt.s32.totalorder %s1732_s27, %s1728_s21 }
  0x63   :  { %1459 = vmatprep.subr.msk.bf16.mxu1 %vm1129_vm4, %v1767_v10  ;;  %1491 = vmatprep.subr.msk.bf16.mxu0 %vm1129_vm4, %v1767_v10  ;;  %vm1912_vm5 = vmpackc.low %vm134_vm3, %vm133_vm2  ;;  %v1946_v16 = vadd.s32 72, %v1883_v1  ;;  %v1965_v17 = vadd.s32 80, %v1883_v1  ;;  %v1968_v18 = vadd.s32 88, %v1883_v1  ;;  %v1983_v19 = vadd.s32 96, %v1883_v1  ;;  %v1569_v59 = vld [vmem:[#allocation8] ss:$8 sps:$4 sm:$0xff]  }
  0x64   :  { %1460 = vmatpush3.bf16.msk.msra.mxu1 %vm1129_vm4, %v1767_v10  ;;  %1492 = vmatpush3.bf16.msk.msra.mxu0 %vm1129_vm4, %v1767_v10  ;;  %vm1934_vm8 = vmpackc.low %vm136_vm7, %vm135_vm6  ;;  %vm139_vm12 = vcmp.eq.s32.totalorder %v1943_v15, %v1900_v7  ;;  %v1986_v20 = vadd.s32 104, %v1883_v1  ;;  %v1997_v21 = vadd.s32 112, %v1883_v1  ;;  %v2000_v22 = vadd.s32 120, %v1883_v1  ;;  %v1572_v60 = vld [vmem:[#allocation10 + $0x14] ss:$8 sps:$4 sm:$0xff]   ;;  %p1735_p1 = por %p1734_p0, %p1733_p13 }
  0x65   :  { %1461 = vmatprep.subr.msk.bf16.mxu1 %vm1912_vm5, %v1767_v10  ;;  %1493 = vmatprep.subr.msk.bf16.mxu0 %vm1912_vm5, %v1767_v10  ;;  %vm1135_vm11 = vmpackc.low %vm138_vm10, %vm137_vm9  ;;  %vm140_vm13 = vcmp.eq.s32.totalorder %v1946_v16, %v1900_v7  ;;  %vm141_vm15 = vcmp.eq.s32.totalorder %v1965_v17, %v1900_v7  ;;  %vm142_vm0 = vcmp.eq.s32.totalorder %v1968_v18, %v1900_v7  ;;  %v509_v24 = vadd.s32 128, %v1883_v1  ;;  %v1574_v61 = vld [vmem:[#allocation8 + $0x14] ss:$8 sps:$4 sm:$0xff]   ;;  %v1576_v62 = vld [vmem:[#allocation10 + $0x10] ss:$8 sps:$4 sm:$0xff]  }
  0x66   :  { %vm1137_vm14 = vmpackc.low %vm140_vm13, %vm139_vm12  ;;  %vm143_vm2 = vcmp.eq.s32.totalorder %v1983_v19, %v1900_v7  ;;  %vm144_vm3 = vcmp.eq.s32.totalorder %v1986_v20, %v1900_v7  ;;  %vm146_vm6 = vcmp.eq.s32.totalorder %v2000_v22, %v1900_v7  ;;  %v510_v25 = vadd.s32 136, %v1883_v1  ;;  %v1577_v63 = vld [vmem:[#allocation8 + $0x10] ss:$8 sps:$4 sm:$0xff]   ;;  %v1578_v0 = vld [vmem:[#allocation10 + $0x24] ss:$8 sps:$4 sm:$0xff]   ;;  %p1736_p2 = pnand %p1735_p1, %p1729_p12 }
  0x67   :  { %vm1139_vm1 = vmpackc.low %vm142_vm0, %vm141_vm15  ;;  %v511_v28 = vadd.s32 144, %v1883_v1  ;;  %v512_v29 = vadd.s32 152, %v1883_v1  ;;  %vm546_vm12 = vcmp.eq.s32.totalorder %v1886_v2, %v2021_v26  ;;  %v513_v32 = vadd.s32 160, %v1883_v1  ;;  %v1582_v2 = vld [vmem:[#allocation10 + $0x20] ss:$8 sps:$4 sm:$0xff]  }
  0x68   :  { %1462 = vmatpush3.bf16.msk.msra.mxu1 %vm1912_vm5, %v1767_v10  ;;  %1494 = vmatpush3.bf16.msk.msra.mxu0 %vm1912_vm5, %v1767_v10  ;;  %vm2006_vm4 = vmpackc.low %vm144_vm3, %vm143_vm2  ;;  %vm145_vm5 = vcmp.eq.s32.totalorder %v1997_v21, %v1900_v7  ;;  %vm562_vm9 = vcmp.eq.s32.totalorder %v510_v25, %v2021_v26  ;;  %v514_v33 = vadd.s32 168, %v1883_v1  ;;  %vm548_vm2 = vcmp.eq.s32.totalorder %v1892_v4, %v2021_v26  ;;  %v1584_v4 = vld [vmem:[#allocation10 + $0x34] ss:$8 sps:$4 sm:$0xff]   ;;  %v1589_v7 = vld [vmem:[#allocation8 + $0x30] ss:$8 sps:$4 sm:$0xff]  }
  0x69   :  { %1463 = vmatprep.subr.msk.bf16.mxu1 %vm1934_vm8, %v1767_v10  ;;  %1495 = vmatprep.subr.msk.bf16.mxu0 %vm1934_vm8, %v1767_v10  ;;  %vm2029_vm7 = vmpackc.low %vm146_vm6, %vm145_vm5  ;;  %vm563_vm13 = vcmp.eq.s32.totalorder %v511_v28, %v2021_v26  ;;  %vm565_vm3 = vcmp.eq.s32.totalorder %v513_v32, %v2021_v26  ;;  %v515_v36 = vadd.s32 176, %v1883_v1  ;;  %v516_v37 = vadd.s32 184, %v1883_v1  ;;  %v1590_v8 = vld [vmem:[#allocation10 + $0x44] ss:$8 sps:$4 sm:$0xff]   ;;  %v1595_v11 = vld [vmem:[#allocation8 + $0x40] ss:$8 sps:$4 sm:$0xff]  }
  0x6a   :  { %vm549_vm6 = vcmp.eq.s32.totalorder %v1895_v5, %v2021_v26  ;;  %v517_v40 = vadd.s32 192, %v1883_v1  ;;  %v518_v41 = vadd.s32 200, %v1883_v1  ;;  %v519_v44 = vadd.s32 208, %v1883_v1  ;;  %v1586_v5 = vld [vmem:[#allocation8 + $0x34] ss:$8 sps:$4 sm:$0xff]  }
  0x6b   :  { %v520_v45 = vadd.s32 216, %v1883_v1  ;;  %v521_v48 = vadd.s32 224, %v1883_v1  ;;  %v522_v49 = vadd.s32 232, %v1883_v1  ;;  %v523_v52 = vadd.s32 240, %v1883_v1  ;;  %v1592_v9 = vld [vmem:[#allocation8 + $0x44] ss:$8 sps:$4 sm:$0xff]  }
  0x6c   :  { %1464 = vmatpush3.bf16.msk.msra.mxu1 %vm1934_vm8, %v1767_v10  ;;  %1496 = vmatpush3.bf16.msk.msra.mxu0 %vm1934_vm8, %v1767_v10  ;;  %vm561_vm8 = vcmp.eq.s32.totalorder %v509_v24, %v2021_v26  ;;  %v524_v53 = vadd.s32 248, %v1883_v1  ;;  %v1600_v14 = vld [vmem:[#allocation10 + $0x50] ss:$8 sps:$4 sm:$0xff]  }
  0x6d   :  { %1465 = vmatprep.subr.msk.bf16.mxu1 %vm1135_vm11, %v1767_v10  ;;  %1497 = vmatprep.subr.msk.bf16.mxu0 %vm1135_vm11, %v1767_v10  ;;  %vm1234_vm10 = vmpackc.low %vm562_vm9, %vm561_vm8  ;;  %vm567_vm9 = vcmp.eq.s32.totalorder %v515_v36, %v2021_v26  ;;  %v1613_v23 = vld [vmem:[#allocation8 + $0x70] ss:$8 sps:$4 sm:$0xff]  }
  0x70   :  { %1466 = vmatpush3.bf16.msk.msra.mxu1 %vm1135_vm11, %v1767_v10  ;;  %1498 = vmatpush3.bf16.msk.msra.mxu0 %vm1135_vm11, %v1767_v10  ;;  %vm545_vm11 = vcmp.eq.s32.totalorder %v1883_v1, %v2021_v26  ;;  %v1580_v1 = vld [vmem:[#allocation8 + $0x24] ss:$8 sps:$4 sm:$0xff]  }
  0x71   :  { %1467 = vmatprep.subr.msk.bf16.mxu1 %vm1137_vm14, %v1767_v10  ;;  %1499 = vmatprep.subr.msk.bf16.mxu0 %vm1137_vm14, %v1767_v10  ;;  %vm1218_vm15 = vmpackc.low %vm546_vm12, %vm545_vm11 }
  0x74   :  { %1468 = vmatpush3.bf16.msk.msra.mxu1 %vm1137_vm14, %v1767_v10  ;;  %1500 = vmatpush3.bf16.msk.msra.mxu0 %vm1137_vm14, %v1767_v10  ;;  %vm564_vm14 = vcmp.eq.s32.totalorder %v512_v29, %v2021_v26 }
  0x75   :  { %1469 = vmatprep.subr.msk.bf16.mxu1 %vm1139_vm1, %v1767_v10  ;;  %1501 = vmatprep.subr.msk.bf16.mxu0 %vm1139_vm1, %v1767_v10  ;;  %vm1236_vm0 = vmpackc.low %vm564_vm14, %vm563_vm13  ;;  %vm551_vm13 = vcmp.eq.s32.totalorder %v1921_v12, %v2021_v26  ;;  %vm552_vm14 = vcmp.eq.s32.totalorder %v1924_v13, %v2021_v26  ;;  %v1596_v12 = vld [vmem:[#allocation10 + $0x54] ss:$8 sps:$4 sm:$0xff]  }
  0x76   :  { %v1598_v13 = vld [vmem:[#allocation8 + $0x54] ss:$8 sps:$4 sm:$0xff]  }
  0x78   :  { %1470 = vmatpush3.bf16.msk.msra.mxu1 %vm1139_vm1, %v1767_v10  ;;  %1502 = vmatpush3.bf16.msk.msra.mxu0 %vm1139_vm1, %v1767_v10  ;;  %vm547_vm1 = vcmp.eq.s32.totalorder %v1889_v3, %v2021_v26  ;;  %v1583_v3 = vld [vmem:[#allocation8 + $0x20] ss:$8 sps:$4 sm:$0xff]  }
  0x79   :  { %1471 = vmatprep.subr.msk.bf16.mxu1 %vm2006_vm4, %v1767_v10  ;;  %1503 = vmatprep.subr.msk.bf16.mxu0 %vm2006_vm4, %v1767_v10  ;;  %vm1220_vm5 = vmpackc.low %vm548_vm2, %vm547_vm1 }
  0x7a   :  { %vm1224_vm1 = vmpackc.low %vm552_vm14, %vm551_vm13 }
  0x7c   :  { %1472 = vmatpush3.bf16.msk.msra.mxu1 %vm2006_vm4, %v1767_v10  ;;  %1504 = vmatpush3.bf16.msk.msra.mxu0 %vm2006_vm4, %v1767_v10  ;;  %vm566_vm4 = vcmp.eq.s32.totalorder %v514_v33, %v2021_v26 }
  0x7d   :  { %1473 = vmatprep.subr.msk.bf16.mxu1 %vm2029_vm7, %v1767_v10  ;;  %1505 = vmatprep.subr.msk.bf16.mxu0 %vm2029_vm7, %v1767_v10  ;;  %vm1238_vm8 = vmpackc.low %vm566_vm4, %vm565_vm3  ;;  %vm553_vm3 = vcmp.eq.s32.totalorder %v1943_v15, %v2021_v26  ;;  %vm554_vm4 = vcmp.eq.s32.totalorder %v1946_v16, %v2021_v26  ;;  %v1601_v15 = vld [vmem:[#allocation8 + $0x50] ss:$8 sps:$4 sm:$0xff]   ;;  %v1602_v16 = vld [vmem:[#allocation10 + $0x64] ss:$8 sps:$4 sm:$0xff]  }
  0x80   :  { %1474 = vmatpush3.bf16.msk.msra.mxu1 %vm2029_vm7, %v1767_v10  ;;  %1506 = vmatpush3.bf16.msk.msra.mxu0 %vm2029_vm7, %v1767_v10  ;;  %vm550_vm7 = vcmp.eq.s32.totalorder %v1898_v6, %v2021_v26  ;;  %v1588_v6 = vld [vmem:[#allocation10 + $0x30] ss:$8 sps:$4 sm:$0xff]  }
  0x81   :  { %1331 = vmatprep.subr.msk.bf16.mxu1 %vm1234_vm10, %v1767_v10  ;;  %1395 = vmatprep.subr.msk.bf16.mxu0 %vm1234_vm10, %v1767_v10  ;;  %vm568_vm10 = vcmp.eq.s32.totalorder %v516_v37, %v2021_v26  ;;  %vm1222_vm11 = vmpackc.low %vm550_vm7, %vm549_vm6  ;;  %vm572_vm6 = vcmp.eq.s32.totalorder %v520_v45, %v2021_v26 }
  0x82   :  { %vm1240_vm12 = vmpackc.low %vm568_vm10, %vm567_vm9  ;;  %vm555_vm9 = vcmp.eq.s32.totalorder %v1965_v17, %v2021_v26  ;;  %vm556_vm10 = vcmp.eq.s32.totalorder %v1968_v18, %v2021_v26  ;;  %v1604_v17 = vld [vmem:[#allocation8 + $0x64] ss:$8 sps:$4 sm:$0xff]   ;;  %v1606_v18 = vld [vmem:[#allocation10 + $0x60] ss:$8 sps:$4 sm:$0xff]  }
  0x83   :  { %1476 = vmatmul.mubr.bf16.vlgmr.msra.gmra.mrb[0].mxu1 %v1552_v30  ;;  %1508 = vmatmul.mubr.bf16.vlgmr.msra.gmra.mrb[0].mxu0 %v1553_v31  ;;  %vm1226_vm7 = vmpackc.low %vm554_vm4, %vm553_vm3 }
  0x84   :  { %1332 = vmatpush3.bf16.msk.msra.mxu1 %vm1218_vm15, %v1767_v10  ;;  %1396 = vmatpush3.bf16.msk.msra.mxu0 %vm1218_vm15, %v1767_v10  ;;  %vm569_vm15 = vcmp.eq.s32.totalorder %v517_v40, %v2021_v26  ;;  %vm1228_vm13 = vmpackc.low %vm556_vm10, %vm555_vm9 }
  0x85   :  { %1333 = vmatprep.subr.msk.bf16.mxu1 %vm1236_vm0, %v1767_v10  ;;  %1397 = vmatprep.subr.msk.bf16.mxu0 %vm1236_vm0, %v1767_v10  ;;  %vm570_vm0 = vcmp.eq.s32.totalorder %v518_v41, %v2021_v26 }
  0x86   :  { %1479 = vmatprep.mubr.bf16.mxu1 %v1554_v34  ;;  %1511 = vmatprep.mubr.bf16.mxu0 %v1555_v35  ;;  %vm1242_vm2 = vmpackc.low %vm570_vm0, %vm569_vm15  ;;  %vm557_vm15 = vcmp.eq.s32.totalorder %v1983_v19, %v2021_v26  ;;  %vm558_vm0 = vcmp.eq.s32.totalorder %v1986_v20, %v2021_v26  ;;  %v1607_v19 = vld [vmem:[#allocation8 + $0x60] ss:$8 sps:$4 sm:$0xff]   ;;  %v1608_v20 = vld [vmem:[#allocation10 + $0x74] ss:$8 sps:$4 sm:$0xff]  }
  0x87   :  { %vm1230_vm3 = vmpackc.low %vm558_vm0, %vm557_vm15 }
  0x88   :  { %1334 = vmatpush3.bf16.msk.msra.mxu1 %vm1220_vm5, %v1767_v10  ;;  %1398 = vmatpush3.bf16.msk.msra.mxu0 %vm1220_vm5, %v1767_v10  ;;  %vm571_vm5 = vcmp.eq.s32.totalorder %v519_v44, %v2021_v26 }
  0x89   :  { %1335 = vmatprep.subr.msk.bf16.mxu1 %vm1238_vm8, %v1767_v10  ;;  %1399 = vmatprep.subr.msk.bf16.mxu0 %vm1238_vm8, %v1767_v10  ;;  %vm1244_vm8 = vmpackc.low %vm572_vm6, %vm571_vm5  ;;  %vm559_vm5 = vcmp.eq.s32.totalorder %v1997_v21, %v2021_v26  ;;  %vm560_vm6 = vcmp.eq.s32.totalorder %v2000_v22, %v2021_v26  ;;  %v1610_v21 = vld [vmem:[#allocation8 + $0x74] ss:$8 sps:$4 sm:$0xff]   ;;  %v1612_v22 = vld [vmem:[#allocation10 + $0x70] ss:$8 sps:$4 sm:$0xff]  }
  0x8b   :  { %1480 = vmatmul.mubr.bf16.gmra.mrb[4].mxu1 %v1556_v38  ;;  %1512 = vmatmul.mubr.bf16.gmra.mrb[4].mxu0 %v1557_v39 }
  0x8c   :  { %1336 = vmatpush3.bf16.msk.msra.mxu1 %vm1222_vm11, %v1767_v10  ;;  %1400 = vmatpush3.bf16.msk.msra.mxu0 %vm1222_vm11, %v1767_v10  ;;  %vm573_vm11 = vcmp.eq.s32.totalorder %v521_v48, %v2021_v26 }
  0x8d   :  { %1337 = vmatprep.subr.msk.bf16.mxu1 %vm1240_vm12, %v1767_v10  ;;  %1401 = vmatprep.subr.msk.bf16.mxu0 %vm1240_vm12, %v1767_v10  ;;  %vm574_vm12 = vcmp.eq.s32.totalorder %v522_v49, %v2021_v26 }
  0x8e   :  { %1483 = vmatprep.mubr.bf16.mxu1 %v1558_v42  ;;  %1515 = vmatprep.mubr.bf16.mxu0 %v1559_v43  ;;  %vm1246_vm14 = vmpackc.low %vm574_vm12, %vm573_vm11 }
  0x90   :  { %1338 = vmatpush3.bf16.msk.msra.mxu1 %vm1224_vm1, %v1767_v10  ;;  %1402 = vmatpush3.bf16.msk.msra.mxu0 %vm1224_vm1, %v1767_v10  ;;  %vm575_vm1 = vcmp.eq.s32.totalorder %v523_v52, %v2021_v26 }
  0x91   :  { %1339 = vmatprep.subr.msk.bf16.mxu1 %vm1242_vm2, %v1767_v10  ;;  %1403 = vmatprep.subr.msk.bf16.mxu0 %vm1242_vm2, %v1767_v10  ;;  %vm576_vm2 = vcmp.eq.s32.totalorder %v524_v53, %v2021_v26 }
  0x92   :  { %vm1248_vm4 = vmpackc.low %vm576_vm2, %vm575_vm1 }
  0x93   :  { %1484 = vmatmul.mubr.bf16.gmra.mrb[8].mxu1 %v1560_v46  ;;  %1516 = vmatmul.mubr.bf16.gmra.mrb[8].mxu0 %v1561_v47 }
  0x94   :  { %1340 = vmatpush3.bf16.msk.msra.mxu1 %vm1226_vm7, %v1767_v10  ;;  %1404 = vmatpush3.bf16.msk.msra.mxu0 %vm1226_vm7, %v1767_v10  ;;  %vm1232_vm7 = vmpackc.low %vm560_vm6, %vm559_vm5 }
  0x95   :  { %1341 = vmatprep.subr.msk.bf16.mxu1 %vm1244_vm8, %v1767_v10  ;;  %1405 = vmatprep.subr.msk.bf16.mxu0 %vm1244_vm8, %v1767_v10 }
  0x96   :  { %1487 = vmatprep.mubr.bf16.mxu1 %v1562_v50  ;;  %1519 = vmatprep.mubr.bf16.mxu0 %v1563_v51 }
  0x98   :  { %1342 = vmatpush3.bf16.msk.msra.mxu1 %vm1228_vm13, %v1767_v10  ;;  %1406 = vmatpush3.bf16.msk.msra.mxu0 %vm1228_vm13, %v1767_v10 }
  0x99   :  { %1343 = vmatprep.subr.msk.bf16.mxu1 %vm1246_vm14, %v1767_v10  ;;  %1407 = vmatprep.subr.msk.bf16.mxu0 %vm1246_vm14, %v1767_v10 }
  0x9b   :  { %1488 = vmatmul.mubr.bf16.gmra.mrb[12].mxu1 %v1564_v54  ;;  %1520 = vmatmul.mubr.bf16.gmra.mrb[12].mxu0 %v1565_v55 }
  0x9c   :  { %1344 = vmatpush3.bf16.msk.msra.mxu1 %vm1230_vm3, %v1767_v10  ;;  %1408 = vmatpush3.bf16.msk.msra.mxu0 %vm1230_vm3, %v1767_v10 }
  0x9d   :  { %1345 = vmatprep.subr.msk.bf16.mxu1 %vm1248_vm4, %v1767_v10  ;;  %1409 = vmatprep.subr.msk.bf16.mxu0 %vm1248_vm4, %v1767_v10 }
  0x9e   :  { %801 = vmatprep.mubr.bf16.mxu1 %v1568_v56  ;;  %978 = vmatprep.mubr.bf16.mxu0 %v1571_v57 }
  0xa0   :  { %1346 = vmatpush3.bf16.msk.msra.mxu1 %vm1232_vm7, %v1767_v10  ;;  %1410 = vmatpush3.bf16.msk.msra.mxu0 %vm1232_vm7, %v1767_v10  ;;  %v1594_v10 = vld [vmem:[#allocation10 + $0x40] ss:$8 sps:$4 sm:$0xff]  }
  0xa3   :  { %802 = vmatmul.mubr.bf16.vlgmr.msra.gmra.mrb[16].mxu1 %v1566_v58  ;;  %979 = vmatmul.mubr.bf16.vlgmr.msra.gmra.mrb[16].mxu0 %v1569_v59 }
  0xa4   :  { %809 = vmatprep.mubr.bf16.mxu1 %v1572_v60  ;;  %986 = vmatprep.mubr.bf16.mxu0 %v1574_v61 }
  0xab   :  { %810 = vmatmul.mubr.bf16.gmra.mrb[20].mxu1 %v1576_v62  ;;  %987 = vmatmul.mubr.bf16.gmra.mrb[20].mxu0 %v1577_v63 }
  0xac   :  { %817 = vmatprep.mubr.bf16.mxu1 %v1578_v0  ;;  %994 = vmatprep.mubr.bf16.mxu0 %v1580_v1 }
  0xb3   :  { %818 = vmatmul.mubr.bf16.gmra.mrb[24].mxu1 %v1582_v2  ;;  %995 = vmatmul.mubr.bf16.gmra.mrb[24].mxu0 %v1583_v3 }
  0xb4   :  { %825 = vmatprep.mubr.bf16.mxu1 %v1584_v4  ;;  %1002 = vmatprep.mubr.bf16.mxu0 %v1586_v5 }
  0xbb   :  { %826 = vmatmul.mubr.bf16.gmra.mrb[28].mxu1 %v1588_v6  ;;  %1003 = vmatmul.mubr.bf16.gmra.mrb[28].mxu0 %v1589_v7 }
  0xbc   :  { %833 = vmatprep.mubr.bf16.mxu1 %v1590_v8  ;;  %1010 = vmatprep.mubr.bf16.mxu0 %v1592_v9 }
  0xc3   :  { %834 = vmatmul.mubr.bf16.gmra.mrb[32].mxu1 %v1594_v10  ;;  %1011 = vmatmul.mubr.bf16.gmra.mrb[32].mxu0 %v1595_v11 }
  0xc4   :  { %841 = vmatprep.mubr.bf16.mxu1 %v1596_v12  ;;  %1018 = vmatprep.mubr.bf16.mxu0 %v1598_v13 }
  0xcb   :  { %842 = vmatmul.mubr.bf16.gmra.mrb[36].mxu1 %v1600_v14  ;;  %1019 = vmatmul.mubr.bf16.gmra.mrb[36].mxu0 %v1601_v15 }
  0xcc   :  { %849 = vmatprep.mubr.bf16.mxu1 %v1602_v16  ;;  %1026 = vmatprep.mubr.bf16.mxu0 %v1604_v17 }
  0xd3   :  { %850 = vmatmul.mubr.bf16.gmra.mrb[40].mxu1 %v1606_v18  ;;  %1027 = vmatmul.mubr.bf16.gmra.mrb[40].mxu0 %v1607_v19 }
  0xd4   :  { %857 = vmatprep.mubr.bf16.mxu1 %v1608_v20  ;;  %1034 = vmatprep.mubr.bf16.mxu0 %v1610_v21 }
  0xdb   :  { %858 = vmatmul.mubr.bf16.gmra.mrb[44].mxu1 %v1612_v22  ;;  %1035 = vmatmul.mubr.bf16.gmra.mrb[44].mxu0 %v1613_v23 }
 0x156   :  { %v1477_v24 = vpop.f32.mrb[0].mxu1  ;;  %v1509_v25 = vpop.f32.mrb[0].mxu0 }
 0x157   :  { %v2145_v26 = vadd.f32 %v1509_v25, %v1477_v24  ;;  %v301_v27 = vpop.f32.mrb[1].mxu1  ;;  %v446_v28 = vpop.f32.mrb[1].mxu0 }
 0x158   :  { %v447_v29 = vadd.f32 %v446_v28, %v301_v27  ;;  %v1478_v30 = vpop.f32.mrb[2].mxu1  ;;  %v1510_v31 = vpop.f32.mrb[2].mxu0 }
 0x159   :  { %v2147_v32 = vadd.f32 %v1510_v31, %v1478_v30  ;;  %v304_v33 = vpop.f32.mrb[3].mxu1  ;;  %v449_v34 = vpop.f32.mrb[3].mxu0 }
 0x15a   :  { %v450_v35 = vadd.f32 %v449_v34, %v304_v33 }
 0x15e   :  { %v1481_v36 = vpop.f32.mrb[4].mxu1  ;;  %v1513_v37 = vpop.f32.mrb[4].mxu0 }
 0x15f   :  { %v2149_v38 = vadd.f32 %v1513_v37, %v1481_v36  ;;  %v317_v39 = vpop.f32.mrb[5].mxu1  ;;  %v462_v40 = vpop.f32.mrb[5].mxu0 }
 0x160   :  { %v2151_v41 = vadd.f32 %v462_v40, %v317_v39  ;;  %v1482_v42 = vpop.f32.mrb[6].mxu1  ;;  %v1514_v43 = vpop.f32.mrb[6].mxu0 }
 0x161   :  { %v2153_v44 = vadd.f32 %v1514_v43, %v1482_v42  ;;  %v320_v45 = vpop.f32.mrb[7].mxu1  ;;  %v465_v46 = vpop.f32.mrb[7].mxu0 }
 0x162   :  { %v2155_v47 = vadd.f32 %v465_v46, %v320_v45 }
 0x166   :  { %v1485_v48 = vpop.f32.mrb[8].mxu1  ;;  %v1517_v49 = vpop.f32.mrb[8].mxu0 }
 0x167   :  { %v2157_v50 = vadd.f32 %v1517_v49, %v1485_v48  ;;  %v333_v51 = vpop.f32.mrb[9].mxu1  ;;  %v478_v52 = vpop.f32.mrb[9].mxu0 }
 0x168   :  { %v2159_v53 = vadd.f32 %v478_v52, %v333_v51  ;;  %v1486_v54 = vpop.f32.mrb[10].mxu1  ;;  %v1518_v55 = vpop.f32.mrb[10].mxu0 }
 0x169   :  { %v2161_v56 = vadd.f32 %v1518_v55, %v1486_v54  ;;  %v336_v57 = vpop.f32.mrb[11].mxu1  ;;  %v481_v58 = vpop.f32.mrb[11].mxu0 }
 0x16a   :  { %v2163_v59 = vadd.f32 %v481_v58, %v336_v57 }
 0x16e   :  { %v1489_v60 = vpop.f32.mrb[12].mxu1  ;;  %v1521_v61 = vpop.f32.mrb[12].mxu0 }
 0x16f   :  { %v2165_v62 = vadd.f32 %v1521_v61, %v1489_v60  ;;  %v349_v63 = vpop.f32.mrb[13].mxu1  ;;  %v494_v0 = vpop.f32.mrb[13].mxu0 }
 0x170   :  { %v2167_v1 = vadd.f32 %v494_v0, %v349_v63  ;;  %v1490_v2 = vpop.f32.mrb[14].mxu1  ;;  %v1522_v3 = vpop.f32.mrb[14].mxu0 }
 0x171   :  { %v2169_v4 = vadd.f32 %v1522_v3, %v1490_v2  ;;  %v352_v5 = vpop.f32.mrb[15].mxu1  ;;  %v497_v6 = vpop.f32.mrb[15].mxu0 }
 0x172   :  { %v2171_v7 = vadd.f32 %v497_v6, %v352_v5 }
 0x176   :  { %v1347_v8 = vpop.f32.mrb[16].mxu1  ;;  %v1411_v9 = vpop.f32.mrb[16].mxu0 }
 0x177   :  { %v1348_v10 = vpop.f32.mrb[17].mxu1  ;;  %v1412_v11 = vpop.f32.mrb[17].mxu0 }
 0x178   :  { %v1349_v12 = vadd.f32 %v1348_v10, %v1347_v8  ;;  %v1413_v13 = vadd.f32 %v1412_v11, %v1411_v9  ;;  %v1350_v14 = vpop.f32.mrb[18].mxu1  ;;  %v1414_v15 = vpop.f32.mrb[18].mxu0 }
 0x179   :  { %v1351_v16 = vpop.f32.mrb[19].mxu1  ;;  %v1415_v17 = vpop.f32.mrb[19].mxu0 }
 0x17a   :  { %v981_v18 = vadd.f32 %v1413_v13, %v1349_v12  ;;  %v1352_v19 = vadd.f32 %v1351_v16, %v1350_v14  ;;  %v1416_v20 = vadd.f32 %v1415_v17, %v1414_v15 }
 0x17c   :  { %v1043_v21 = vmul.f32 %v981_v18, %v447_v29  ;;  %v984_v22 = vadd.f32 %v1416_v20, %v1352_v19 }
 0x17e   :  { %v1044_v23 = vmul.f32 %v984_v22, %v450_v35  ;;  %v1353_v24 = vpop.f32.mrb[20].mxu1  ;;  %v1417_v25 = vpop.f32.mrb[20].mxu0 }
 0x17f   :  { %v1354_v27 = vpop.f32.mrb[21].mxu1  ;;  %v1418_v28 = vpop.f32.mrb[21].mxu0 }
 0x180   :  { %v1059_v30 = vadd.f32 %v1044_v23, %v1043_v21  ;;  %v1355_v31 = vadd.f32 %v1354_v27, %v1353_v24  ;;  %v1419_v33 = vadd.f32 %v1418_v28, %v1417_v25  ;;  %v1356_v34 = vpop.f32.mrb[22].mxu1  ;;  %v1420_v36 = vpop.f32.mrb[22].mxu0 }
 0x181   :  { %v1357_v37 = vpop.f32.mrb[23].mxu1  ;;  %v1421_v39 = vpop.f32.mrb[23].mxu0 }
 0x182   :  { %v989_v40 = vadd.f32 %v1419_v33, %v1355_v31  ;;  %v1358_v42 = vadd.f32 %v1357_v37, %v1356_v34  ;;  %v1422_v43 = vadd.f32 %v1421_v39, %v1420_v36 }
 0x184   :  { %v1045_v45 = vmul.f32 %v989_v40, %v2145_v26  ;;  %v992_v46 = vadd.f32 %v1422_v43, %v1358_v42 }
 0x186   :  { %v1060_v29 = vadd.f32 %v1059_v30, %v1045_v45  ;;  %v1046_v35 = vmul.f32 %v992_v46, %v2147_v32  ;;  %v1359_v48 = vpop.f32.mrb[24].mxu1  ;;  %v1423_v49 = vpop.f32.mrb[24].mxu0 }
 0x187   :  { %v1360_v51 = vpop.f32.mrb[25].mxu1  ;;  %v1424_v52 = vpop.f32.mrb[25].mxu0 }
 0x188   :  { %v1061_v54 = vadd.f32 %v1060_v29, %v1046_v35  ;;  %v1361_v55 = vadd.f32 %v1360_v51, %v1359_v48  ;;  %v1425_v57 = vadd.f32 %v1424_v52, %v1423_v49  ;;  %v1362_v58 = vpop.f32.mrb[26].mxu1  ;;  %v1426_v60 = vpop.f32.mrb[26].mxu0 }
 0x189   :  { %v1363_v61 = vpop.f32.mrb[27].mxu1  ;;  %v1427_v63 = vpop.f32.mrb[27].mxu0 }
 0x18a   :  { %v997_v0 = vadd.f32 %v1425_v57, %v1361_v55  ;;  %v1364_v2 = vadd.f32 %v1363_v61, %v1362_v58  ;;  %v1428_v3 = vadd.f32 %v1427_v63, %v1426_v60 }
 0x18c   :  { %v1047_v26 = vmul.f32 %v997_v0, %v2151_v41  ;;  %v1000_v5 = vadd.f32 %v1428_v3, %v1364_v2 }
 0x18e   :  { %v1062_v6 = vadd.f32 %v1061_v54, %v1047_v26  ;;  %v1048_v32 = vmul.f32 %v1000_v5, %v2155_v47  ;;  %v1365_v8 = vpop.f32.mrb[28].mxu1  ;;  %v1429_v9 = vpop.f32.mrb[28].mxu0 }
 0x18f   :  { %v1366_v10 = vpop.f32.mrb[29].mxu1  ;;  %v1430_v11 = vpop.f32.mrb[29].mxu0 }
 0x190   :  { %v1063_v12 = vadd.f32 %v1062_v6, %v1048_v32  ;;  %v1367_v13 = vadd.f32 %v1366_v10, %v1365_v8  ;;  %v1431_v14 = vadd.f32 %v1430_v11, %v1429_v9  ;;  %v1368_v15 = vpop.f32.mrb[30].mxu1  ;;  %v1432_v16 = vpop.f32.mrb[30].mxu0 }
 0x191   :  { %v1369_v17 = vpop.f32.mrb[31].mxu1  ;;  %v1433_v18 = vpop.f32.mrb[31].mxu0 }
 0x192   :  { %v1005_v19 = vadd.f32 %v1431_v14, %v1367_v13  ;;  %v1370_v20 = vadd.f32 %v1369_v17, %v1368_v15  ;;  %v1434_v21 = vadd.f32 %v1433_v18, %v1432_v16 }
 0x194   :  { %v1049_v41 = vmul.f32 %v1005_v19, %v2149_v38  ;;  %v1008_v22 = vadd.f32 %v1434_v21, %v1370_v20 }
 0x196   :  { %v1064_v23 = vadd.f32 %v1063_v12, %v1049_v41  ;;  %v1050_v47 = vmul.f32 %v1008_v22, %v2153_v44  ;;  %v1371_v24 = vpop.f32.mrb[32].mxu1  ;;  %v1435_v25 = vpop.f32.mrb[32].mxu0 }
 0x197   :  { %v1372_v27 = vpop.f32.mrb[33].mxu1  ;;  %v1436_v28 = vpop.f32.mrb[33].mxu0 }
 0x198   :  { %v1065_v30 = vadd.f32 %v1064_v23, %v1050_v47  ;;  %v1373_v31 = vadd.f32 %v1372_v27, %v1371_v24  ;;  %v1437_v33 = vadd.f32 %v1436_v28, %v1435_v25  ;;  %v1374_v34 = vpop.f32.mrb[34].mxu1  ;;  %v1438_v36 = vpop.f32.mrb[34].mxu0 }
 0x199   :  { %v1375_v37 = vpop.f32.mrb[35].mxu1  ;;  %v1439_v39 = vpop.f32.mrb[35].mxu0 }
 0x19a   :  { %v1013_v40 = vadd.f32 %v1437_v33, %v1373_v31  ;;  %v1376_v42 = vadd.f32 %v1375_v37, %v1374_v34  ;;  %v1440_v43 = vadd.f32 %v1439_v39, %v1438_v36 }
 0x19c   :  { %v1051_v38 = vmul.f32 %v1013_v40, %v2159_v53  ;;  %v1016_v45 = vadd.f32 %v1440_v43, %v1376_v42 }
 0x19e   :  { %v1066_v46 = vadd.f32 %v1065_v30, %v1051_v38  ;;  %v1052_v44 = vmul.f32 %v1016_v45, %v2163_v59  ;;  %v1377_v29 = vpop.f32.mrb[36].mxu1  ;;  %v1441_v35 = vpop.f32.mrb[36].mxu0 }
 0x19f   :  { %v1378_v48 = vpop.f32.mrb[37].mxu1  ;;  %v1442_v49 = vpop.f32.mrb[37].mxu0 }
 0x1a0   :  { %v1067_v51 = vadd.f32 %v1066_v46, %v1052_v44  ;;  %v1379_v52 = vadd.f32 %v1378_v48, %v1377_v29  ;;  %v1443_v54 = vadd.f32 %v1442_v49, %v1441_v35  ;;  %v1380_v55 = vpop.f32.mrb[38].mxu1  ;;  %v1444_v57 = vpop.f32.mrb[38].mxu0 }
 0x1a1   :  { %v1381_v58 = vpop.f32.mrb[39].mxu1  ;;  %v1445_v60 = vpop.f32.mrb[39].mxu0 }
 0x1a2   :  { %v1021_v61 = vadd.f32 %v1443_v54, %v1379_v52  ;;  %v1382_v63 = vadd.f32 %v1381_v58, %v1380_v55  ;;  %v1446_v0 = vadd.f32 %v1445_v60, %v1444_v57 }
 0x1a4   :  { %v1053_v53 = vmul.f32 %v1021_v61, %v2157_v50  ;;  %v1024_v2 = vadd.f32 %v1446_v0, %v1382_v63 }
 0x1a6   :  { %v1068_v3 = vadd.f32 %v1067_v51, %v1053_v53  ;;  %v1054_v59 = vmul.f32 %v1024_v2, %v2161_v56  ;;  %v1383_v26 = vpop.f32.mrb[40].mxu1  ;;  %v1447_v5 = vpop.f32.mrb[40].mxu0 }
 0x1a7   :  { %v1384_v6 = vpop.f32.mrb[41].mxu1  ;;  %v1448_v32 = vpop.f32.mrb[41].mxu0 }
 0x1a8   :  { %v1069_v8 = vadd.f32 %v1068_v3, %v1054_v59  ;;  %v1385_v9 = vadd.f32 %v1384_v6, %v1383_v26  ;;  %v1449_v10 = vadd.f32 %v1448_v32, %v1447_v5  ;;  %v1386_v11 = vpop.f32.mrb[42].mxu1  ;;  %v1450_v12 = vpop.f32.mrb[42].mxu0 }
 0x1a9   :  { %v1387_v13 = vpop.f32.mrb[43].mxu1  ;;  %v1451_v14 = vpop.f32.mrb[43].mxu0 }
 0x1aa   :  { %v1029_v15 = vadd.f32 %v1449_v10, %v1385_v9  ;;  %v1388_v16 = vadd.f32 %v1387_v13, %v1386_v11  ;;  %v1452_v17 = vadd.f32 %v1451_v14, %v1450_v12 }
 0x1ac   :  { %v1055_v50 = vmul.f32 %v1029_v15, %v2167_v1  ;;  %v1032_v18 = vadd.f32 %v1452_v17, %v1388_v16 }
 0x1ae   :  { %v1070_v19 = vadd.f32 %v1069_v8, %v1055_v50  ;;  %v1056_v56 = vmul.f32 %v1032_v18, %v2171_v7  ;;  %v1389_v20 = vpop.f32.mrb[44].mxu1  ;;  %v1453_v21 = vpop.f32.mrb[44].mxu0 }
 0x1af   :  { %v1390_v41 = vpop.f32.mrb[45].mxu1  ;;  %v1454_v22 = vpop.f32.mrb[45].mxu0 }
 0x1b0   :  { %v1071_v23 = vadd.f32 %v1070_v19, %v1056_v56  ;;  %v1391_v47 = vadd.f32 %v1390_v41, %v1389_v20  ;;  %v1455_v24 = vadd.f32 %v1454_v22, %v1453_v21  ;;  %v1392_v25 = vpop.f32.mrb[46].mxu1  ;;  %v1456_v27 = vpop.f32.mrb[46].mxu0 }
 0x1b1   :  { %v1393_v28 = vpop.f32.mrb[47].mxu1  ;;  %v1457_v30 = vpop.f32.mrb[47].mxu0 }
 0x1b2   :  { %v1037_v31 = vadd.f32 %v1455_v24, %v1391_v47  ;;  %v1394_v33 = vadd.f32 %v1393_v28, %v1392_v25  ;;  %v1458_v34 = vadd.f32 %v1457_v30, %v1456_v27 }
 0x1b4   :  { %v1057_v1 = vmul.f32 %v1037_v31, %v2165_v62  ;;  %v1040_v36 = vadd.f32 %v1458_v34, %v1394_v33 }
 0x1b6   :  { %v1072_v37 = vadd.f32 %v1071_v23, %v1057_v1  ;;  %v1058_v7 = vmul.f32 %v1040_v36, %v2169_v4 }
 0x1b8   :  { %v1073_v39 = vadd.f32 %v1072_v37, %v1058_v7 }
 0x1ba   :  { %v1074_v40 = vrot.slane %v1073_v39, 4 }
 0x1bc   :  { %v1075_v42 = vadd.f32 %v1074_v40, %v1073_v39 }
 0x1be   :  { %v1076_v43 = vrot.slane %v1075_v42, 2 }
 0x1c0   :  { %v1077_v38 = vadd.f32 %v1076_v43, %v1075_v42 }
 0x1c2   :  { %v1078_v45 = vrot.slane %v1077_v38, 1 }
 0x1c4   :  { %v1079_v46 = vadd.f32 %v1078_v45, %v1077_v38 }
 0x1c6   :  { %v1298_v44 = vmul.f32 -1.442695, %v1079_v46 }
 0x1c8   :  { %1614 = vpow2.f32 %v1298_v44 }
 0x1d2   :  { %v1615_v29 = vpop.eup %1614 }
 0x1d3   :  { %v1083_v35 = vadd.f32 1.0, %v1615_v29 }
 0x1d5   :  { %1616 = vrcp.f32 %v1083_v35 }
 0x1df   :  { %v1617_v62 = vpop.eup %1616 }
 0x1e0   :  { %1086 = vst [vmem:[#allocation11] sm:$0x1] %v1617_v62 }
 0x1e1   :  { %1739 = shalt.err (!%p1736_p2)
}
 0x1e2   :  { %s1740_s16 = scalar_lea.hbm %s2205_s6, 16 }
 0x1e3   :  { %p1741_p3 = scmp.ne.s32.totalorder %s2205_s6, %s1740_s16  ;;  %p1744_p4 = scmp.lt.u32.totalorder %s1740_s16, %s2205_s6 }
 0x1e5   :  { %p1746_p5 = pnand %p1744_p4, %p1741_p3 }
 0x1e7   :  { %1749 = shalt.err (!%p1746_p5)
}
 0x1e8   :  { %1096 = dma.vmem_to_hbm [thread:$0]  %s1094_s2, 16, %s2205_s6, [#allocation4]  }
 0x1e9   :  { %1756 = dma.done.wait [#allocation4], 16  }
 0x1ea   :  { %1757 = vsyncadd [#allocation4], 4294967280 }
 0x1eb   :  { %1100 = vsyncpa [#allocation3], 1 }
 0x1ec   :  { %1101 = vsyncpa [#allocation6], 1 }
 0x1ed   :  { %1102 = vsyncpa [#allocation9], 1 }
 0x1ee   :  { %1103 = vsyncpa [#allocation4], 1 }

</bundles_post_ra>
